<compile_context>
chip_gen: v6e
topology: v6e:2x2x1
jax: 0.10.0
libtpu: 0.0.40
codegen_flags: <defaults>
</compile_context>

<pallas_src>
import functools
import math

import jax
import jax.numpy as jnp
from jax import lax
from jax.experimental import pallas as pl
from jax.experimental.pallas import tpu as pltpu


# ------------------------------ fused kernel -------------------------------

def fused_mha_kernel(*refs, num_heads, scale, self_attn, has_mask, compute_dtype):
    refs = list(refs)
    o_ref = refs.pop()                       # (bb, Lq, D) output block
    w_ref = refs.pop()                       # (D, 4D) = [WqT | WkT | WvT | WoT]
    m_ref = refs.pop() if has_mask else None  # (bb, Lq, Lk) int32 mask (1=visible)
    if self_attn:
        (x_ref,) = refs                      # (bb, Lq, D)
    else:
        xq_ref, xk_ref, xv_ref = refs        # (bb, Lq, D), (bb, Lk, D), (bb, Lk, D)

    bb, Lq, D = o_ref.shape
    hd = D // num_heads
    # Contract last dims of Q and K directly (no k.T / XLU relayout).
    dn = (((1,), (1,)), ((), ()))

    w = w_ref[...].astype(compute_dtype)     # single stacked weight slab
    wo = w[:, 3 * D:]                        # (D, D) output projection

    if self_attn:
        Lk = Lq
        x = x_ref[...].reshape(bb * Lq, D).astype(compute_dtype)
        # Fused QKV projection: one (bb*Lq, D) @ (D, 3D) MXU push.
        qkv = jnp.dot(x, w[:, :3 * D], preferred_element_type=jnp.float32)
        q = qkv[:, :D] * scale               # scale folded into q once
        k = qkv[:, D:2 * D]
        v = qkv[:, 2 * D:3 * D]
    else:
        Lk = xk_ref.shape[1]
        xq = xq_ref[...].reshape(bb * Lq, D).astype(compute_dtype)
        xk = xk_ref[...].reshape(bb * Lk, D).astype(compute_dtype)
        xv = xv_ref[...].reshape(bb * Lk, D).astype(compute_dtype)
        q = jnp.dot(xq, w[:, :D], preferred_element_type=jnp.float32) * scale
        k = jnp.dot(xk, w[:, D:2 * D], preferred_element_type=jnp.float32)
        v = jnp.dot(xv, w[:, 2 * D:3 * D], preferred_element_type=jnp.float32)

    # Per-batch-element attention (static unroll over the block's batch dim).
    for b in range(bb):
        qb = q[b * Lq:(b + 1) * Lq, :].astype(compute_dtype)   # (Lq, D)
        kb = k[b * Lk:(b + 1) * Lk, :].astype(compute_dtype)   # (Lk, D)
        vb = v[b * Lk:(b + 1) * Lk, :].astype(compute_dtype)   # (Lk, D)
        if has_mask:
            visible = m_ref[b] != 0                            # (Lq, Lk) bool

        heads = []
        for h in range(num_heads):                             # static unroll, H=4
            sl = slice(h * hd, (h + 1) * hd)
            s = lax.dot_general(qb[:, sl], kb[:, sl], dn,
                                preferred_element_type=jnp.float32)  # (Lq, Lk)
            if has_mask:
                # Finite fill: fully-masked rows become uniform, not NaN.
                s = jnp.where(visible, s, -1e30)
            s = s - jnp.max(s, axis=-1, keepdims=True)
            p = jnp.exp(s)
            denom = jnp.sum(p, axis=-1, keepdims=True)         # (Lq, 1) f32
            oh = jnp.dot(p.astype(compute_dtype), vb[:, sl],
                         preferred_element_type=jnp.float32)   # (Lq, hd)
            heads.append(oh / denom)                           # exact divide

        # Lane-merge all heads and do ONE (Lq, D) @ (D, D) output projection.
        attn = jnp.concatenate(heads, axis=-1)                 # (Lq, D) f32
        o_ref[b] = jnp.dot(attn.astype(compute_dtype), wo,
                           preferred_element_type=jnp.float32).astype(o_ref.dtype)

    # TODO(synk): dropout is identity in eval mode; not implemented.


# -------------------------------- wrapper -----------------------------------

def multi_head_attention(query, key, value, params, mask=None, *, num_heads,
                         compute_dtype=jnp.bfloat16, batch_blocks=1):
    """Forward pass matching the PyTorch MultiHeadAttention (eval mode).

    query/key/value: (B, L, D); mask broadcastable to (B, 1, Lq, Lk),
    1 = visible, 0 = masked. params: (wq, wk, wv, wo) in PyTorch (out, in)
    layout. `batch_blocks` = number of grid steps over batch (1 = collapsed,
    best for v5e/v6e; 2 keeps both v7x TensorCores busy).
    """
    B, Lq, D = query.shape
    Lk = key.shape[1]
    assert D % num_heads == 0
    assert B % batch_blocks == 0
    bb = B // batch_blocks
    hd = D // num_heads
    wq, wk, wv, wo = params

    # One stacked, pre-transposed weight slab: (D, 4D) = [WqT | WkT | WvT | WoT].
    # 4*D = 128 lanes -> one DMA descriptor, one lane-dense vreg-wide block.
    w_all = jnp.concatenate([wq.T, wk.T, wv.T, wo.T], axis=1)

    self_attn = (query is key) and (key is value)
    has_mask = mask is not None

    kernel = functools.partial(
        fused_mha_kernel, num_heads=num_heads, scale=1.0 / math.sqrt(hd),
        self_attn=self_attn, has_mask=has_mask, compute_dtype=compute_dtype)

    in_specs = []
    args = []
    q_spec = pl.BlockSpec((bb, Lq, D), lambda i: (i, 0, 0))
    kv_spec = pl.BlockSpec((bb, Lk, D), lambda i: (i, 0, 0))
    if self_attn:
        in_specs.append(q_spec)
        args.append(query)
    else:
        in_specs += [q_spec, kv_spec, kv_spec]
        args += [query, key, value]
    if has_mask:
        # Compact int32 mask (no wrapper-side select / f32 bias materialization;
        # the compare+select happens in-kernel on VPU slack).
        m = jnp.broadcast_to(mask, (B, 1, Lq, Lk))[:, 0].astype(jnp.int32)
        in_specs.append(pl.BlockSpec((bb, Lq, Lk), lambda i: (i, 0, 0)))
        args.append(m)
    in_specs.append(pl.BlockSpec((D, 4 * D), lambda i: (0, 0)))
    args.append(w_all)

    return pl.pallas_call(
        kernel,
        out_shape=jax.ShapeDtypeStruct((B, Lq, D), query.dtype),
        grid=(batch_blocks,),
        in_specs=in_specs,
        out_specs=pl.BlockSpec((bb, Lq, D), lambda i: (i, 0, 0)),
        compiler_params=pltpu.CompilerParams(
            dimension_semantics=("parallel",)),
    )(*args)


# ------------------------------ reference ----------------------------------

def mha_reference(query, key, value, params, mask, *, num_heads):
    B, Lq, D = query.shape
    Lk = key.shape[1]
    hd = D // num_heads
    wq, wk, wv, wo = params
    q = (query @ wq.T).reshape(B, Lq, num_heads, hd).transpose(0, 2, 1, 3)
    k = (key @ wk.T).reshape(B, Lk, num_heads, hd).transpose(0, 2, 1, 3)
    v = (value @ wv.T).reshape(B, Lk, num_heads, hd).transpose(0, 2, 1, 3)
    s = jnp.einsum("bhqd,bhkd->bhqk", q, k) / math.sqrt(hd)
    if mask is not None:
        s = jnp.where(mask == 0, -jnp.inf, s)
    p = jax.nn.softmax(s, axis=-1)
    o = jnp.einsum("bhqk,bhkd->bhqd", p, v)
    o = o.transpose(0, 2, 1, 3).reshape(B, Lq, D)
    return o @ wo.T


# -------------------------------- main --------------------------------------

if __name__ == "__main__":
    B, L, D, H = 2, 8, 32, 4

    key0 = jax.random.PRNGKey(0)
    kq, kk, kv, kwq, kwk, kwv, kwo, km = jax.random.split(key0, 8)

    query = jax.random.normal(kq, (B, L, D), jnp.float32)
    key_t = jax.random.normal(kk, (B, L, D), jnp.float32)
    value = jax.random.normal(kv, (B, L, D), jnp.float32)

    # Deterministic weight init, PyTorch Linear default: U(-1/sqrt(D), 1/sqrt(D)).
    bound = 1.0 / math.sqrt(D)
    wq = jax.random.uniform(kwq, (D, D), jnp.float32, -bound, bound)
    wk = jax.random.uniform(kwk, (D, D), jnp.float32, -bound, bound)
    wv = jax.random.uniform(kwv, (D, D), jnp.float32, -bound, bound)
    wo = jax.random.uniform(kwo, (D, D), jnp.float32, -bound, bound)
    params = (wq, wk, wv, wo)

    # (B, 1, L_q, L_k) mask: 1 visible, 0 masked; mask out last 2 keys of batch 1.
    mask = jnp.ones((B, 1, L, L), jnp.int32)
    mask = mask.at[1, :, :, -2:].set(0)

    # --- Test 1: cross-attention, masked, bf16 MXU operands, collapsed grid ---
    out_bf16 = multi_head_attention(query, key_t, value, params, mask,
                                    num_heads=H)            # defaults: bf16, grid=(1,)
    out_bf16 = jax.block_until_ready(out_bf16)
    ref1 = mha_reference(query, key_t, value, params, mask, num_heads=H)
    assert out_bf16.shape == (B, L, D)
    # bf16 operand rounding (~2^-9 relative per operand) through four chained
    # matmuls + softmax -> a few e-3 absolute on O(1) outputs.
    assert jnp.allclose(out_bf16, ref1, atol=3e-2, rtol=3e-2), (
        f"bf16 path: max abs err {jnp.max(jnp.abs(out_bf16 - ref1))}"
    )

    # --- Test 2: self-attention fast path (fused QKV), no mask, f32 compute,
    #             grid=(2,) "parallel" over batch (v7x two-TC configuration) ---
    out_f32 = multi_head_attention(query, query, query, params, None,
                                   num_heads=H,
                                   compute_dtype=jnp.float32, batch_blocks=2)
    out_f32 = jax.block_until_ready(out_f32)
    ref2 = mha_reference(query, query, query, params, None, num_heads=H)
    assert out_f32.shape == (B, L, D)
    assert jnp.allclose(out_f32, ref2, atol=1e-3, rtol=1e-3), (
        f"f32 path: max abs err {jnp.max(jnp.abs(out_f32 - ref2))}"
    )

    print("KERNEL_OK")
</pallas_src>

<mosaic_0001>
module attributes {stable_mosaic.version = 11 : i64} {
  func.func @fused_mha_kernel(%arg0: i32, %arg1: memref<2x8x32xf32, #tpu.memory_space<vmem>>, %arg2: memref<2x8x32xf32, #tpu.memory_space<vmem>>, %arg3: memref<2x8x32xf32, #tpu.memory_space<vmem>>, %arg4: memref<2x8x8xi32, #tpu.memory_space<vmem>>, %arg5: memref<32x128xf32, #tpu.memory_space<vmem>>, %arg6: memref<2x8x32xf32, #tpu.memory_space<vmem>>) attributes {dimension_semantics = [#tpu.dimension_semantics<parallel>], iteration_bounds = array<i64: 1>, scalar_prefetch = 0 : i64, scratch_operands = 0 : i64, tpu.core_type = #tpu.core_type<tc>, window_params = [{transform_indices = @transform_0, window_bounds = array<i64: 2, 8, 32>}, {transform_indices = @transform_1, window_bounds = array<i64: 2, 8, 32>}, {transform_indices = @transform_2, window_bounds = array<i64: 2, 8, 32>}, {transform_indices = @transform_3, window_bounds = array<i64: 2, 8, 8>}, {pipeline_mode = #tpu.pipeline_mode<synchronous>, transform_indices = @transform_4, window_bounds = array<i64: 32, 128>}, {transform_indices = @transform_5, window_bounds = array<i64: 2, 8, 32>}]} {
    %c0 = arith.constant 0 : index
    %c0_0 = arith.constant 0 : index
    %0 = vector.load %arg5[%c0, %c0_0] : memref<32x128xf32, #tpu.memory_space<vmem>>, vector<32x128xf32>
    %1 = arith.truncf %0 : vector<32x128xf32> to vector<32x128xbf16>
    %2 = vector.extract_strided_slice %1 {offsets = [0, 96], sizes = [32, 32], strides = [1, 1]} : vector<32x128xbf16> to vector<32x32xbf16>
    %c0_1 = arith.constant 0 : index
    %c0_2 = arith.constant 0 : index
    %c0_3 = arith.constant 0 : index
    %3 = vector.load %arg1[%c0_1, %c0_2, %c0_3] : memref<2x8x32xf32, #tpu.memory_space<vmem>>, vector<2x8x32xf32>
    %4 = vector.shape_cast %3 : vector<2x8x32xf32> to vector<16x32xf32>
    %5 = arith.truncf %4 : vector<16x32xf32> to vector<16x32xbf16>
    %c0_4 = arith.constant 0 : index
    %c0_5 = arith.constant 0 : index
    %c0_6 = arith.constant 0 : index
    %6 = vector.load %arg2[%c0_4, %c0_5, %c0_6] : memref<2x8x32xf32, #tpu.memory_space<vmem>>, vector<2x8x32xf32>
    %7 = vector.shape_cast %6 : vector<2x8x32xf32> to vector<16x32xf32>
    %8 = arith.truncf %7 : vector<16x32xf32> to vector<16x32xbf16>
    %c0_7 = arith.constant 0 : index
    %c0_8 = arith.constant 0 : index
    %c0_9 = arith.constant 0 : index
    %9 = vector.load %arg3[%c0_7, %c0_8, %c0_9] : memref<2x8x32xf32, #tpu.memory_space<vmem>>, vector<2x8x32xf32>
    %10 = vector.shape_cast %9 : vector<2x8x32xf32> to vector<16x32xf32>
    %11 = arith.truncf %10 : vector<16x32xf32> to vector<16x32xbf16>
    %12 = vector.extract_strided_slice %1 {offsets = [0, 0], sizes = [32, 32], strides = [1, 1]} : vector<32x128xbf16> to vector<32x32xbf16>
    %cst = arith.constant dense<0.000000e+00> : vector<16x32xf32>
    %13 = tpu.matmul %5, %12, %cst {dimension_numbers = #tpu.dot_dimension_numbers<[1], [0], [0], [1], [0, 0, 1, 1], [], []>} : vector<16x32xbf16>, vector<32x32xbf16>, vector<16x32xf32> -> vector<16x32xf32>
    %cst_10 = arith.constant 0.353553385 : f32
    %14 = vector.broadcast %cst_10 : f32 to vector<16x32xf32>
    %15 = arith.mulf %13, %14 : vector<16x32xf32>
    %16 = vector.extract_strided_slice %1 {offsets = [0, 32], sizes = [32, 32], strides = [1, 1]} : vector<32x128xbf16> to vector<32x32xbf16>
    %cst_11 = arith.constant dense<0.000000e+00> : vector<16x32xf32>
    %17 = tpu.matmul %8, %16, %cst_11 {dimension_numbers = #tpu.dot_dimension_numbers<[1], [0], [0], [1], [0, 0, 1, 1], [], []>} : vector<16x32xbf16>, vector<32x32xbf16>, vector<16x32xf32> -> vector<16x32xf32>
    %18 = vector.extract_strided_slice %1 {offsets = [0, 64], sizes = [32, 32], strides = [1, 1]} : vector<32x128xbf16> to vector<32x32xbf16>
    %cst_12 = arith.constant dense<0.000000e+00> : vector<16x32xf32>
    %19 = tpu.matmul %11, %18, %cst_12 {dimension_numbers = #tpu.dot_dimension_numbers<[1], [0], [0], [1], [0, 0, 1, 1], [], []>} : vector<16x32xbf16>, vector<32x32xbf16>, vector<16x32xf32> -> vector<16x32xf32>
    %20 = vector.extract_strided_slice %15 {offsets = [0, 0], sizes = [8, 32], strides = [1, 1]} : vector<16x32xf32> to vector<8x32xf32>
    %21 = arith.truncf %20 : vector<8x32xf32> to vector<8x32xbf16>
    %22 = vector.extract_strided_slice %17 {offsets = [0, 0], sizes = [8, 32], strides = [1, 1]} : vector<16x32xf32> to vector<8x32xf32>
    %23 = arith.truncf %22 : vector<8x32xf32> to vector<8x32xbf16>
    %24 = vector.extract_strided_slice %19 {offsets = [0, 0], sizes = [8, 32], strides = [1, 1]} : vector<16x32xf32> to vector<8x32xf32>
    %25 = arith.truncf %24 : vector<8x32xf32> to vector<8x32xbf16>
    %c0_13 = arith.constant 0 : index
    %c0_14 = arith.constant 0 : index
    %c0_15 = arith.constant 0 : index
    %26 = vector.load %arg4[%c0_13, %c0_14, %c0_15] : memref<2x8x8xi32, #tpu.memory_space<vmem>>, vector<1x8x8xi32>
    %27 = vector.shape_cast %26 : vector<1x8x8xi32> to vector<8x8xi32>
    %c0_i32 = arith.constant 0 : i32
    %28 = vector.broadcast %c0_i32 : i32 to vector<8x8xi32>
    %29 = arith.cmpi ne, %27, %28 : vector<8x8xi32>
    %30 = vector.extract_strided_slice %21 {offsets = [0, 0], sizes = [8, 8], strides = [1, 1]} : vector<8x32xbf16> to vector<8x8xbf16>
    %31 = vector.extract_strided_slice %23 {offsets = [0, 0], sizes = [8, 8], strides = [1, 1]} : vector<8x32xbf16> to vector<8x8xbf16>
    %cst_16 = arith.constant dense<0.000000e+00> : vector<8x8xf32>
    %32 = tpu.matmul %30, %31, %cst_16 {dimension_numbers = #tpu.dot_dimension_numbers<[1], [1], [0], [0], [0, 0, 1, 0], [], []>} : vector<8x8xbf16>, vector<8x8xbf16>, vector<8x8xf32> -> vector<8x8xf32>
    %cst_17 = arith.constant -1.000000e+30 : f32
    %33 = vector.broadcast %cst_17 : f32 to vector<8x8xf32>
    %34 = arith.select %29, %32, %33 : vector<8x8xi1>, vector<8x8xf32>
    %cst_18 = arith.constant dense<0xFF800000> : vector<8xf32>
    %35 = vector.multi_reduction <maximumf>, %34, %cst_18 [1] : vector<8x8xf32> to vector<8xf32>
    %36 = vector.shape_cast %35 : vector<8xf32> to vector<8x1xf32>
    %37 = vector.broadcast %36 : vector<8x1xf32> to vector<8x8xf32>
    %38 = arith.subf %34, %37 : vector<8x8xf32>
    %39 = math.exp %38 : vector<8x8xf32>
    %cst_19 = arith.constant dense<0.000000e+00> : vector<8xf32>
    %40 = vector.multi_reduction <add>, %39, %cst_19 [1] : vector<8x8xf32> to vector<8xf32>
    %41 = vector.shape_cast %40 : vector<8xf32> to vector<8x1xf32>
    %42 = arith.truncf %39 : vector<8x8xf32> to vector<8x8xbf16>
    %43 = vector.extract_strided_slice %25 {offsets = [0, 0], sizes = [8, 8], strides = [1, 1]} : vector<8x32xbf16> to vector<8x8xbf16>
    %cst_20 = arith.constant dense<0.000000e+00> : vector<8x8xf32>
    %44 = tpu.matmul %42, %43, %cst_20 {dimension_numbers = #tpu.dot_dimension_numbers<[1], [0], [0], [1], [0, 0, 1, 1], [], []>} : vector<8x8xbf16>, vector<8x8xbf16>, vector<8x8xf32> -> vector<8x8xf32>
    %45 = vector.broadcast %41 : vector<8x1xf32> to vector<8x8xf32>
    %46 = arith.divf %44, %45 : vector<8x8xf32>
    %47 = vector.extract_strided_slice %21 {offsets = [0, 8], sizes = [8, 8], strides = [1, 1]} : vector<8x32xbf16> to vector<8x8xbf16>
    %48 = vector.extract_strided_slice %23 {offsets = [0, 8], sizes = [8, 8], strides = [1, 1]} : vector<8x32xbf16> to vector<8x8xbf16>
    %cst_21 = arith.constant dense<0.000000e+00> : vector<8x8xf32>
    %49 = tpu.matmul %47, %48, %cst_21 {dimension_numbers = #tpu.dot_dimension_numbers<[1], [1], [0], [0], [0, 0, 1, 0], [], []>} : vector<8x8xbf16>, vector<8x8xbf16>, vector<8x8xf32> -> vector<8x8xf32>
    %cst_22 = arith.constant -1.000000e+30 : f32
    %50 = vector.broadcast %cst_22 : f32 to vector<8x8xf32>
    %51 = arith.select %29, %49, %50 : vector<8x8xi1>, vector<8x8xf32>
    %cst_23 = arith.constant dense<0xFF800000> : vector<8xf32>
    %52 = vector.multi_reduction <maximumf>, %51, %cst_23 [1] : vector<8x8xf32> to vector<8xf32>
    %53 = vector.shape_cast %52 : vector<8xf32> to vector<8x1xf32>
    %54 = vector.broadcast %53 : vector<8x1xf32> to vector<8x8xf32>
    %55 = arith.subf %51, %54 : vector<8x8xf32>
    %56 = math.exp %55 : vector<8x8xf32>
    %cst_24 = arith.constant dense<0.000000e+00> : vector<8xf32>
    %57 = vector.multi_reduction <add>, %56, %cst_24 [1] : vector<8x8xf32> to vector<8xf32>
    %58 = vector.shape_cast %57 : vector<8xf32> to vector<8x1xf32>
    %59 = arith.truncf %56 : vector<8x8xf32> to vector<8x8xbf16>
    %60 = vector.extract_strided_slice %25 {offsets = [0, 8], sizes = [8, 8], strides = [1, 1]} : vector<8x32xbf16> to vector<8x8xbf16>
    %cst_25 = arith.constant dense<0.000000e+00> : vector<8x8xf32>
    %61 = tpu.matmul %59, %60, %cst_25 {dimension_numbers = #tpu.dot_dimension_numbers<[1], [0], [0], [1], [0, 0, 1, 1], [], []>} : vector<8x8xbf16>, vector<8x8xbf16>, vector<8x8xf32> -> vector<8x8xf32>
    %62 = vector.broadcast %58 : vector<8x1xf32> to vector<8x8xf32>
    %63 = arith.divf %61, %62 : vector<8x8xf32>
    %64 = vector.extract_strided_slice %21 {offsets = [0, 16], sizes = [8, 8], strides = [1, 1]} : vector<8x32xbf16> to vector<8x8xbf16>
    %65 = vector.extract_strided_slice %23 {offsets = [0, 16], sizes = [8, 8], strides = [1, 1]} : vector<8x32xbf16> to vector<8x8xbf16>
    %cst_26 = arith.constant dense<0.000000e+00> : vector<8x8xf32>
    %66 = tpu.matmul %64, %65, %cst_26 {dimension_numbers = #tpu.dot_dimension_numbers<[1], [1], [0], [0], [0, 0, 1, 0], [], []>} : vector<8x8xbf16>, vector<8x8xbf16>, vector<8x8xf32> -> vector<8x8xf32>
    %cst_27 = arith.constant -1.000000e+30 : f32
    %67 = vector.broadcast %cst_27 : f32 to vector<8x8xf32>
    %68 = arith.select %29, %66, %67 : vector<8x8xi1>, vector<8x8xf32>
    %cst_28 = arith.constant dense<0xFF800000> : vector<8xf32>
    %69 = vector.multi_reduction <maximumf>, %68, %cst_28 [1] : vector<8x8xf32> to vector<8xf32>
    %70 = vector.shape_cast %69 : vector<8xf32> to vector<8x1xf32>
    %71 = vector.broadcast %70 : vector<8x1xf32> to vector<8x8xf32>
    %72 = arith.subf %68, %71 : vector<8x8xf32>
    %73 = math.exp %72 : vector<8x8xf32>
    %cst_29 = arith.constant dense<0.000000e+00> : vector<8xf32>
    %74 = vector.multi_reduction <add>, %73, %cst_29 [1] : vector<8x8xf32> to vector<8xf32>
    %75 = vector.shape_cast %74 : vector<8xf32> to vector<8x1xf32>
    %76 = arith.truncf %73 : vector<8x8xf32> to vector<8x8xbf16>
    %77 = vector.extract_strided_slice %25 {offsets = [0, 16], sizes = [8, 8], strides = [1, 1]} : vector<8x32xbf16> to vector<8x8xbf16>
    %cst_30 = arith.constant dense<0.000000e+00> : vector<8x8xf32>
    %78 = tpu.matmul %76, %77, %cst_30 {dimension_numbers = #tpu.dot_dimension_numbers<[1], [0], [0], [1], [0, 0, 1, 1], [], []>} : vector<8x8xbf16>, vector<8x8xbf16>, vector<8x8xf32> -> vector<8x8xf32>
    %79 = vector.broadcast %75 : vector<8x1xf32> to vector<8x8xf32>
    %80 = arith.divf %78, %79 : vector<8x8xf32>
    %81 = vector.extract_strided_slice %21 {offsets = [0, 24], sizes = [8, 8], strides = [1, 1]} : vector<8x32xbf16> to vector<8x8xbf16>
    %82 = vector.extract_strided_slice %23 {offsets = [0, 24], sizes = [8, 8], strides = [1, 1]} : vector<8x32xbf16> to vector<8x8xbf16>
    %cst_31 = arith.constant dense<0.000000e+00> : vector<8x8xf32>
    %83 = tpu.matmul %81, %82, %cst_31 {dimension_numbers = #tpu.dot_dimension_numbers<[1], [1], [0], [0], [0, 0, 1, 0], [], []>} : vector<8x8xbf16>, vector<8x8xbf16>, vector<8x8xf32> -> vector<8x8xf32>
    %cst_32 = arith.constant -1.000000e+30 : f32
    %84 = vector.broadcast %cst_32 : f32 to vector<8x8xf32>
    %85 = arith.select %29, %83, %84 : vector<8x8xi1>, vector<8x8xf32>
    %cst_33 = arith.constant dense<0xFF800000> : vector<8xf32>
    %86 = vector.multi_reduction <maximumf>, %85, %cst_33 [1] : vector<8x8xf32> to vector<8xf32>
    %87 = vector.shape_cast %86 : vector<8xf32> to vector<8x1xf32>
    %88 = vector.broadcast %87 : vector<8x1xf32> to vector<8x8xf32>
    %89 = arith.subf %85, %88 : vector<8x8xf32>
    %90 = math.exp %89 : vector<8x8xf32>
    %cst_34 = arith.constant dense<0.000000e+00> : vector<8xf32>
    %91 = vector.multi_reduction <add>, %90, %cst_34 [1] : vector<8x8xf32> to vector<8xf32>
    %92 = vector.shape_cast %91 : vector<8xf32> to vector<8x1xf32>
    %93 = arith.truncf %90 : vector<8x8xf32> to vector<8x8xbf16>
    %94 = vector.extract_strided_slice %25 {offsets = [0, 24], sizes = [8, 8], strides = [1, 1]} : vector<8x32xbf16> to vector<8x8xbf16>
    %cst_35 = arith.constant dense<0.000000e+00> : vector<8x8xf32>
    %95 = tpu.matmul %93, %94, %cst_35 {dimension_numbers = #tpu.dot_dimension_numbers<[1], [0], [0], [1], [0, 0, 1, 1], [], []>} : vector<8x8xbf16>, vector<8x8xbf16>, vector<8x8xf32> -> vector<8x8xf32>
    %96 = vector.broadcast %92 : vector<8x1xf32> to vector<8x8xf32>
    %97 = arith.divf %95, %96 : vector<8x8xf32>
    %98 = tpu.concatenate %46, %63, %80, %97 in 1 : vector<8x8xf32>, vector<8x8xf32>, vector<8x8xf32>, vector<8x8xf32> -> vector<8x32xf32>
    %99 = arith.truncf %98 : vector<8x32xf32> to vector<8x32xbf16>
    %cst_36 = arith.constant dense<0.000000e+00> : vector<8x32xf32>
    %100 = tpu.matmul %99, %2, %cst_36 {dimension_numbers = #tpu.dot_dimension_numbers<[1], [0], [0], [1], [0, 0, 1, 1], [], []>} : vector<8x32xbf16>, vector<32x32xbf16>, vector<8x32xf32> -> vector<8x32xf32>
    %c0_37 = arith.constant 0 : index
    %c0_38 = arith.constant 0 : index
    %c0_39 = arith.constant 0 : index
    %101 = vector.load %arg6[%c0_37, %c0_38, %c0_39] : memref<2x8x32xf32, #tpu.memory_space<vmem>>, vector<1x8x32xf32>
    %102 = vector.shape_cast %101 : vector<1x8x32xf32> to vector<8x32xf32>
    %103 = vector.shape_cast %100 : vector<8x32xf32> to vector<1x8x32xf32>
    tpu.vector_store %arg6[%c0_37, %c0_38, %c0_39], %103 {strides = array<i32>} : memref<2x8x32xf32, #tpu.memory_space<vmem>>, vector<1x8x32xf32>,
    %104 = vector.extract_strided_slice %15 {offsets = [8, 0], sizes = [8, 32], strides = [1, 1]} : vector<16x32xf32> to vector<8x32xf32>
    %105 = arith.truncf %104 : vector<8x32xf32> to vector<8x32xbf16>
    %106 = vector.extract_strided_slice %17 {offsets = [8, 0], sizes = [8, 32], strides = [1, 1]} : vector<16x32xf32> to vector<8x32xf32>
    %107 = arith.truncf %106 : vector<8x32xf32> to vector<8x32xbf16>
    %108 = vector.extract_strided_slice %19 {offsets = [8, 0], sizes = [8, 32], strides = [1, 1]} : vector<16x32xf32> to vector<8x32xf32>
    %109 = arith.truncf %108 : vector<8x32xf32> to vector<8x32xbf16>
    %c1 = arith.constant 1 : index
    %c0_40 = arith.constant 0 : index
    %c0_41 = arith.constant 0 : index
    %110 = vector.load %arg4[%c1, %c0_40, %c0_41] : memref<2x8x8xi32, #tpu.memory_space<vmem>>, vector<1x8x8xi32>
    %111 = vector.shape_cast %110 : vector<1x8x8xi32> to vector<8x8xi32>
    %c0_i32_42 = arith.constant 0 : i32
    %112 = vector.broadcast %c0_i32_42 : i32 to vector<8x8xi32>
    %113 = arith.cmpi ne, %111, %112 : vector<8x8xi32>
    %114 = vector.extract_strided_slice %105 {offsets = [0, 0], sizes = [8, 8], strides = [1, 1]} : vector<8x32xbf16> to vector<8x8xbf16>
    %115 = vector.extract_strided_slice %107 {offsets = [0, 0], sizes = [8, 8], strides = [1, 1]} : vector<8x32xbf16> to vector<8x8xbf16>
    %cst_43 = arith.constant dense<0.000000e+00> : vector<8x8xf32>
    %116 = tpu.matmul %114, %115, %cst_43 {dimension_numbers = #tpu.dot_dimension_numbers<[1], [1], [0], [0], [0, 0, 1, 0], [], []>} : vector<8x8xbf16>, vector<8x8xbf16>, vector<8x8xf32> -> vector<8x8xf32>
    %cst_44 = arith.constant -1.000000e+30 : f32
    %117 = vector.broadcast %cst_44 : f32 to vector<8x8xf32>
    %118 = arith.select %113, %116, %117 : vector<8x8xi1>, vector<8x8xf32>
    %cst_45 = arith.constant dense<0xFF800000> : vector<8xf32>
    %119 = vector.multi_reduction <maximumf>, %118, %cst_45 [1] : vector<8x8xf32> to vector<8xf32>
    %120 = vector.shape_cast %119 : vector<8xf32> to vector<8x1xf32>
    %121 = vector.broadcast %120 : vector<8x1xf32> to vector<8x8xf32>
    %122 = arith.subf %118, %121 : vector<8x8xf32>
    %123 = math.exp %122 : vector<8x8xf32>
    %cst_46 = arith.constant dense<0.000000e+00> : vector<8xf32>
    %124 = vector.multi_reduction <add>, %123, %cst_46 [1] : vector<8x8xf32> to vector<8xf32>
    %125 = vector.shape_cast %124 : vector<8xf32> to vector<8x1xf32>
    %126 = arith.truncf %123 : vector<8x8xf32> to vector<8x8xbf16>
    %127 = vector.extract_strided_slice %109 {offsets = [0, 0], sizes = [8, 8], strides = [1, 1]} : vector<8x32xbf16> to vector<8x8xbf16>
    %cst_47 = arith.constant dense<0.000000e+00> : vector<8x8xf32>
    %128 = tpu.matmul %126, %127, %cst_47 {dimension_numbers = #tpu.dot_dimension_numbers<[1], [0], [0], [1], [0, 0, 1, 1], [], []>} : vector<8x8xbf16>, vector<8x8xbf16>, vector<8x8xf32> -> vector<8x8xf32>
    %129 = vector.broadcast %125 : vector<8x1xf32> to vector<8x8xf32>
    %130 = arith.divf %128, %129 : vector<8x8xf32>
    %131 = vector.extract_strided_slice %105 {offsets = [0, 8], sizes = [8, 8], strides = [1, 1]} : vector<8x32xbf16> to vector<8x8xbf16>
    %132 = vector.extract_strided_slice %107 {offsets = [0, 8], sizes = [8, 8], strides = [1, 1]} : vector<8x32xbf16> to vector<8x8xbf16>
    %cst_48 = arith.constant dense<0.000000e+00> : vector<8x8xf32>
    %133 = tpu.matmul %131, %132, %cst_48 {dimension_numbers = #tpu.dot_dimension_numbers<[1], [1], [0], [0], [0, 0, 1, 0], [], []>} : vector<8x8xbf16>, vector<8x8xbf16>, vector<8x8xf32> -> vector<8x8xf32>
    %cst_49 = arith.constant -1.000000e+30 : f32
    %134 = vector.broadcast %cst_49 : f32 to vector<8x8xf32>
    %135 = arith.select %113, %133, %134 : vector<8x8xi1>, vector<8x8xf32>
    %cst_50 = arith.constant dense<0xFF800000> : vector<8xf32>
    %136 = vector.multi_reduction <maximumf>, %135, %cst_50 [1] : vector<8x8xf32> to vector<8xf32>
    %137 = vector.shape_cast %136 : vector<8xf32> to vector<8x1xf32>
    %138 = vector.broadcast %137 : vector<8x1xf32> to vector<8x8xf32>
    %139 = arith.subf %135, %138 : vector<8x8xf32>
    %140 = math.exp %139 : vector<8x8xf32>
    %cst_51 = arith.constant dense<0.000000e+00> : vector<8xf32>
    %141 = vector.multi_reduction <add>, %140, %cst_51 [1] : vector<8x8xf32> to vector<8xf32>
    %142 = vector.shape_cast %141 : vector<8xf32> to vector<8x1xf32>
    %143 = arith.truncf %140 : vector<8x8xf32> to vector<8x8xbf16>
    %144 = vector.extract_strided_slice %109 {offsets = [0, 8], sizes = [8, 8], strides = [1, 1]} : vector<8x32xbf16> to vector<8x8xbf16>
    %cst_52 = arith.constant dense<0.000000e+00> : vector<8x8xf32>
    %145 = tpu.matmul %143, %144, %cst_52 {dimension_numbers = #tpu.dot_dimension_numbers<[1], [0], [0], [1], [0, 0, 1, 1], [], []>} : vector<8x8xbf16>, vector<8x8xbf16>, vector<8x8xf32> -> vector<8x8xf32>
    %146 = vector.broadcast %142 : vector<8x1xf32> to vector<8x8xf32>
    %147 = arith.divf %145, %146 : vector<8x8xf32>
    %148 = vector.extract_strided_slice %105 {offsets = [0, 16], sizes = [8, 8], strides = [1, 1]} : vector<8x32xbf16> to vector<8x8xbf16>
    %149 = vector.extract_strided_slice %107 {offsets = [0, 16], sizes = [8, 8], strides = [1, 1]} : vector<8x32xbf16> to vector<8x8xbf16>
    %cst_53 = arith.constant dense<0.000000e+00> : vector<8x8xf32>
    %150 = tpu.matmul %148, %149, %cst_53 {dimension_numbers = #tpu.dot_dimension_numbers<[1], [1], [0], [0], [0, 0, 1, 0], [], []>} : vector<8x8xbf16>, vector<8x8xbf16>, vector<8x8xf32> -> vector<8x8xf32>
    %cst_54 = arith.constant -1.000000e+30 : f32
    %151 = vector.broadcast %cst_54 : f32 to vector<8x8xf32>
    %152 = arith.select %113, %150, %151 : vector<8x8xi1>, vector<8x8xf32>
    %cst_55 = arith.constant dense<0xFF800000> : vector<8xf32>
    %153 = vector.multi_reduction <maximumf>, %152, %cst_55 [1] : vector<8x8xf32> to vector<8xf32>
    %154 = vector.shape_cast %153 : vector<8xf32> to vector<8x1xf32>
    %155 = vector.broadcast %154 : vector<8x1xf32> to vector<8x8xf32>
    %156 = arith.subf %152, %155 : vector<8x8xf32>
    %157 = math.exp %156 : vector<8x8xf32>
    %cst_56 = arith.constant dense<0.000000e+00> : vector<8xf32>
    %158 = vector.multi_reduction <add>, %157, %cst_56 [1] : vector<8x8xf32> to vector<8xf32>
    %159 = vector.shape_cast %158 : vector<8xf32> to vector<8x1xf32>
    %160 = arith.truncf %157 : vector<8x8xf32> to vector<8x8xbf16>
    %161 = vector.extract_strided_slice %109 {offsets = [0, 16], sizes = [8, 8], strides = [1, 1]} : vector<8x32xbf16> to vector<8x8xbf16>
    %cst_57 = arith.constant dense<0.000000e+00> : vector<8x8xf32>
    %162 = tpu.matmul %160, %161, %cst_57 {dimension_numbers = #tpu.dot_dimension_numbers<[1], [0], [0], [1], [0, 0, 1, 1], [], []>} : vector<8x8xbf16>, vector<8x8xbf16>, vector<8x8xf32> -> vector<8x8xf32>
    %163 = vector.broadcast %159 : vector<8x1xf32> to vector<8x8xf32>
    %164 = arith.divf %162, %163 : vector<8x8xf32>
    %165 = vector.extract_strided_slice %105 {offsets = [0, 24], sizes = [8, 8], strides = [1, 1]} : vector<8x32xbf16> to vector<8x8xbf16>
    %166 = vector.extract_strided_slice %107 {offsets = [0, 24], sizes = [8, 8], strides = [1, 1]} : vector<8x32xbf16> to vector<8x8xbf16>
    %cst_58 = arith.constant dense<0.000000e+00> : vector<8x8xf32>
    %167 = tpu.matmul %165, %166, %cst_58 {dimension_numbers = #tpu.dot_dimension_numbers<[1], [1], [0], [0], [0, 0, 1, 0], [], []>} : vector<8x8xbf16>, vector<8x8xbf16>, vector<8x8xf32> -> vector<8x8xf32>
    %cst_59 = arith.constant -1.000000e+30 : f32
    %168 = vector.broadcast %cst_59 : f32 to vector<8x8xf32>
    %169 = arith.select %113, %167, %168 : vector<8x8xi1>, vector<8x8xf32>
    %cst_60 = arith.constant dense<0xFF800000> : vector<8xf32>
    %170 = vector.multi_reduction <maximumf>, %169, %cst_60 [1] : vector<8x8xf32> to vector<8xf32>
    %171 = vector.shape_cast %170 : vector<8xf32> to vector<8x1xf32>
    %172 = vector.broadcast %171 : vector<8x1xf32> to vector<8x8xf32>
    %173 = arith.subf %169, %172 : vector<8x8xf32>
    %174 = math.exp %173 : vector<8x8xf32>
    %cst_61 = arith.constant dense<0.000000e+00> : vector<8xf32>
    %175 = vector.multi_reduction <add>, %174, %cst_61 [1] : vector<8x8xf32> to vector<8xf32>
    %176 = vector.shape_cast %175 : vector<8xf32> to vector<8x1xf32>
    %177 = arith.truncf %174 : vector<8x8xf32> to vector<8x8xbf16>
    %178 = vector.extract_strided_slice %109 {offsets = [0, 24], sizes = [8, 8], strides = [1, 1]} : vector<8x32xbf16> to vector<8x8xbf16>
    %cst_62 = arith.constant dense<0.000000e+00> : vector<8x8xf32>
    %179 = tpu.matmul %177, %178, %cst_62 {dimension_numbers = #tpu.dot_dimension_numbers<[1], [0], [0], [1], [0, 0, 1, 1], [], []>} : vector<8x8xbf16>, vector<8x8xbf16>, vector<8x8xf32> -> vector<8x8xf32>
    %180 = vector.broadcast %176 : vector<8x1xf32> to vector<8x8xf32>
    %181 = arith.divf %179, %180 : vector<8x8xf32>
    %182 = tpu.concatenate %130, %147, %164, %181 in 1 : vector<8x8xf32>, vector<8x8xf32>, vector<8x8xf32>, vector<8x8xf32> -> vector<8x32xf32>
    %183 = arith.truncf %182 : vector<8x32xf32> to vector<8x32xbf16>
    %cst_63 = arith.constant dense<0.000000e+00> : vector<8x32xf32>
    %184 = tpu.matmul %183, %2, %cst_63 {dimension_numbers = #tpu.dot_dimension_numbers<[1], [0], [0], [1], [0, 0, 1, 1], [], []>} : vector<8x32xbf16>, vector<32x32xbf16>, vector<8x32xf32> -> vector<8x32xf32>
    %c1_64 = arith.constant 1 : index
    %c0_65 = arith.constant 0 : index
    %c0_66 = arith.constant 0 : index
    %185 = vector.load %arg6[%c1_64, %c0_65, %c0_66] : memref<2x8x32xf32, #tpu.memory_space<vmem>>, vector<1x8x32xf32>
    %186 = vector.shape_cast %185 : vector<1x8x32xf32> to vector<8x32xf32>
    %187 = vector.shape_cast %184 : vector<8x32xf32> to vector<1x8x32xf32>
    tpu.vector_store %arg6[%c1_64, %c0_65, %c0_66], %187 {strides = array<i32>} : memref<2x8x32xf32, #tpu.memory_space<vmem>>, vector<1x8x32xf32>,
    return
  }
  func.func @transform_0(%arg0: i32) -> (i32, i32, i32) {
    %c0_i32 = arith.constant 0 : i32
    %c0_i32_0 = arith.constant 0 : i32
    %c0_i32_1 = arith.constant 0 : i32
    return %arg0, %c0_i32, %c0_i32_0 : i32, i32, i32
  }
  func.func @transform_1(%arg0: i32) -> (i32, i32, i32) {
    %c0_i32 = arith.constant 0 : i32
    %c0_i32_0 = arith.constant 0 : i32
    %c0_i32_1 = arith.constant 0 : i32
    return %arg0, %c0_i32, %c0_i32_0 : i32, i32, i32
  }
  func.func @transform_2(%arg0: i32) -> (i32, i32, i32) {
    %c0_i32 = arith.constant 0 : i32
    %c0_i32_0 = arith.constant 0 : i32
    %c0_i32_1 = arith.constant 0 : i32
    return %arg0, %c0_i32, %c0_i32_0 : i32, i32, i32
  }
  func.func @transform_3(%arg0: i32) -> (i32, i32, i32) {
    %c0_i32 = arith.constant 0 : i32
    %c0_i32_0 = arith.constant 0 : i32
    %c0_i32_1 = arith.constant 0 : i32
    return %arg0, %c0_i32, %c0_i32_0 : i32, i32, i32
  }
  func.func @transform_4(%arg0: i32) -> (i32, i32) {
    %c0_i32 = arith.constant 0 : i32
    %c0_i32_0 = arith.constant 0 : i32
    %c0_i32_1 = arith.constant 0 : i32
    return %c0_i32, %c0_i32_0 : i32, i32
  }
  func.func @transform_5(%arg0: i32) -> (i32, i32, i32) {
    %c0_i32 = arith.constant 0 : i32
    %c0_i32_0 = arith.constant 0 : i32
    %c0_i32_1 = arith.constant 0 : i32
    return %arg0, %c0_i32, %c0_i32_0 : i32, i32, i32
  }
}

</mosaic_0001>

<bundles_post_ra>
// kernel: tpu_custom_call.1
= control target key start
LH: loop header
LB: loop body
LE: loop exit
PB: predicated region body
PF: predicated region fallthrough
CT: control target
= control target key end

     0   :  { %10 = vsyncpa [#allocation3], 0  ;;  %s1961_s0 = inlined_call_operand.hbm [shape: f32[2,8,32], index: 0, kind: input, shape index: {}]   ;;  %s1962_s1 = inlined_call_operand.hbm [shape: f32[2,8,32], index: 1, kind: input, shape index: {}]   ;;  %s1963_s2 = inlined_call_operand.hbm [shape: f32[2,8,32], index: 2, kind: input, shape index: {}]   ;;  %s1964_s3 = inlined_call_operand.hbm [shape: s32[2,8,8], index: 3, kind: input, shape index: {}]   ;;  %s1965_s4 = inlined_call_operand.hbm [shape: f32[32,128], index: 4, kind: input, shape index: {}]   ;;  %s1966_s5 = inlined_call_operand.hbm [shape: f32[2,8,32], index: 5, kind: output, shape index: {}]  }
   0x1   :  { %11 = vsyncpa [#allocation6], 0 }
   0x2   :  { %12 = vsyncpa [#allocation9], 0 }
   0x3   :  { %13 = vsyncpa [#allocation4], 0  ;;  %s1679_s18 = smov [#allocation5]   ;;  %s1680_s20 = smov [#allocation8]  }
   0x4   :  { %s31_s19 = sshll.u32 %s1679_s18, 4  ;;  %s55_s21 = sshll.u32 %s1680_s20, 4  ;;  %s32_s19 = int_to_ptr.vmem [resolvable:$true] %s31_s19  ;;  %s56_s21 = int_to_ptr.vmem [resolvable:$true] %s55_s21 }
   0x5   :  { %s1559_s22 = scalar_lea.vmem %s32_s19, 256  ;;  %p1564_p1 = scmp.lt.s32.totalorder %s32_s19, %s32_s19 }
   0x6   :  { %p1560_p0 = scmp.ne.s32.totalorder %s32_s19, %s1559_s22  ;;  %p1565_p2 = scmp.lt.s32.totalorder %s1559_s22, %s1559_s22 }
   0x8   :  { %p1566_p3 = por %p1565_p2, %p1564_p1 }
   0xa   :  { %p1567_p4 = pnand %p1566_p3, %p1560_p0 }
   0xc   :  { %1570 = shalt.err (!%p1567_p4)
}
   0xd   :  { %s1681_s23 = smov 128   ;;  %s1682_s24 = smov 8  }
   0xe   :  { %37 = dma.hbm_to_vmem [thread:$0]  %s1962_s1, 256, %s32_s19, [#allocation6], %s1681_s23, %s1681_s23, %s1682_s24  }
   0xf   :  { %s1579_s27 = scalar_lea.vmem %s56_s21, 256  ;;  %p1584_p6 = scmp.lt.s32.totalorder %s56_s21, %s56_s21 }
  0x10   :  { %p1580_p5 = scmp.ne.s32.totalorder %s56_s21, %s1579_s27  ;;  %p1585_p7 = scmp.lt.s32.totalorder %s1579_s27, %s1579_s27 }
  0x12   :  { %p1586_p8 = por %p1585_p7, %p1584_p6 }
  0x14   :  { %p1587_p9 = pnand %p1586_p8, %p1580_p5 }
  0x16   :  { %1590 = shalt.err (!%p1587_p9)
}
  0x17   :  { %61 = dma.hbm_to_vmem [thread:$0]  %s1964_s3, 256, %s56_s21, [#allocation9], %s1681_s23, %s1681_s23, %s1682_s24  }
  0x18   :  { %s1683_s30 = smov [#allocation2]   ;;  %s1684_s7 = smov [#allocation7]  }
  0x19   :  { %s19_s6 = sshll.u32 %s1683_s30, 4  ;;  %s43_s8 = sshll.u32 %s1684_s7, 4  ;;  %s20_s6 = int_to_ptr.vmem [resolvable:$true] %s19_s6  ;;  %s44_s8 = int_to_ptr.vmem [resolvable:$true] %s43_s8 }
  0x1a   :  { %s1599_s1 = scalar_lea.vmem %s20_s6, 256  ;;  %p1604_p11 = scmp.lt.s32.totalorder %s20_s6, %s20_s6 }
  0x1b   :  { %p1600_p10 = scmp.ne.s32.totalorder %s20_s6, %s1599_s1  ;;  %p1605_p12 = scmp.lt.s32.totalorder %s1599_s1, %s1599_s1 }
  0x1d   :  { %p1606_p13 = por %p1605_p12, %p1604_p11 }
  0x1f   :  { %p1607_p0 = pnand %p1606_p13, %p1600_p10 }
  0x21   :  { %1610 = shalt.err (!%p1607_p0)
}
  0x22   :  { %25 = dma.hbm_to_vmem [thread:$0]  %s1961_s0, 256, %s20_s6, [#allocation3], %s1681_s23, %s1681_s23, %s1682_s24  }
  0x23   :  { %s1619_s3 = scalar_lea.vmem %s44_s8, 256  ;;  %p1624_p2 = scmp.lt.s32.totalorder %s44_s8, %s44_s8 }
  0x24   :  { %p1620_p1 = scmp.ne.s32.totalorder %s44_s8, %s1619_s3  ;;  %p1625_p3 = scmp.lt.s32.totalorder %s1619_s3, %s1619_s3 }
  0x26   :  { %p1626_p4 = por %p1625_p3, %p1624_p2 }
  0x28   :  { %p1627_p5 = pnand %p1626_p4, %p1620_p1 }
  0x2a   :  { %1630 = shalt.err (!%p1627_p5)
}
  0x2b   :  { %49 = dma.hbm_to_vmem [thread:$0]  %s1963_s2, 256, %s44_s8, [#allocation6], %s1681_s23, %s1681_s23, %s1682_s24  }
  0x2c   :  { %s1685_s13 = smov [#allocation10]  }
  0x2d   :  { %s67_s14 = sshll.u32 %s1685_s13, 4  ;;  %s68_s14 = int_to_ptr.vmem [resolvable:$true] %s67_s14 }
  0x2e   :  { %s1639_s15 = scalar_lea.vmem %s68_s14, 512  ;;  %p1644_p7 = scmp.lt.s32.totalorder %s68_s14, %s68_s14 }
  0x2f   :  { %p1640_p6 = scmp.ne.s32.totalorder %s68_s14, %s1639_s15  ;;  %p1645_p8 = scmp.lt.s32.totalorder %s1639_s15, %s1639_s15 }
  0x31   :  { %p1646_p9 = por %p1645_p8, %p1644_p7 }
  0x33   :  { %p1647_p10 = pnand %p1646_p9, %p1640_p6 }
  0x35   :  { %1650 = shalt.err (!%p1647_p10)
}
  0x36   :  { %73 = dma.hbm_to_vmem [thread:$0]  %s1965_s4, 512, %s68_s14, [#allocation9], %s1681_s23, %s1681_s23, %s1682_s24  }
  0x37   :  { %1671 = dma.done.wait [#allocation3], 256  }
  0x38   :  { %1672 = vsyncadd [#allocation3], 4294967040 }
  0x39   :  { %1673 = dma.done.wait [#allocation6], 512  }
  0x3a   :  { %1674 = vsyncadd [#allocation6], 4294966784 }
  0x3b   :  { %1675 = dma.done.wait [#allocation9], 768  }
  0x3c   :  { %1676 = vsyncadd [#allocation9], 4294966528  ;;  %v1686_v0 = vmov 0.0   ;;  %vm1687_vm0 = vmmov 0   ;;  %v92_v1 = vld [vmem:[#allocation10 + $0x10] sm:$0xff]  ;;  %v93_v2 = vld [vmem:[#allocation10 + $0x18] sm:$0xff] }
  0x3d   :  { %1365 = vmatprep.subr.bf16.mxu0 %v1686_v0  ;;  %1373 = vmatprep.subr.bf16.mxu1 %v1686_v0  ;;  %v90_v3 = vld [vmem:[#allocation10] sm:$0xff]  ;;  %v1763_v4 = vpack.c.bf16 %v93_v2, %v92_v1  ;;  %v91_v5 = vld [vmem:[#allocation10 + $0x8] sm:$0xff]  ;;  %s1688_s2 = smov 96   ;;  %vm105_vm1 = vcmask 261120   ;;  %v99_v11 = vld [vmem:[#allocation5] sm:$0xff]  ;;  %vm259_vm2 = vcmask 64512  }
  0x3e   :  { %1369 = vmatprep.mubr.msk.bf16.mxu0 %vm1687_vm0, %v1686_v0  ;;  %1377 = vmatprep.mubr.msk.bf16.mxu1 %vm1687_vm0, %v1686_v0  ;;  %v1766_v6 = vpack.c.bf16 %v91_v5, %v90_v3  ;;  %v96_v7 = vld [vmem:[#allocation2] sm:$0xff]  ;;  %v97_v8 = vld [vmem:[#allocation2 + $0x8] sm:$0xff]  ;;  %v100_v12 = vld [vmem:[#allocation5 + $0x8] sm:$0xff]  ;;  %s1689_s4 = smov 112   ;;  %s1690_s17 = smov 120   ;;  %vm320_vm4 = vcmask 1043456  }
  0x3f   :  { %156 = vrot.lane.b32.xlu0 %v1763_v4, %s1688_s2  ;;  %1366 = vmatpush3.bf16.msra.mxu0 %v1763_v4  ;;  %v98_v9 = vpack.c.bf16 %v97_v8, %v96_v7  ;;  %v101_v14 = vpack.c.bf16 %v100_v12, %v99_v11  ;;  %s1691_s18 = smov 104   ;;  %s1692_s19 = smov 64   ;;  %v102_v36 = vld [vmem:[#allocation7] sm:$0xff]  ;;  %v103_v37 = vld [vmem:[#allocation7 + $0x8] sm:$0xff]  ;;  %v257_v41 = vld [vmem:[#allocation8] sm:$0xff]  ;;  %vm715_vm6 = vcmask 130048  }
  0x40   :  { %1367 = vmatprep.subr.bf16.mxu0 %v1686_v0  ;;  %v104_v39 = vpack.c.bf16 %v103_v37, %v102_v36  ;;  %vm258_vm3 = vcmp.ne.s32.totalorder %v257_v41, 0  ;;  %s1693_s20 = smov 32   ;;  %s1694_s21 = smov 16   ;;  %vm717_vm7 = vcmask 195584  }
  0x41   :  { %s1695_s22 = smov 24   ;;  %s1696_s25 = smov [#allocation11]  }
  0x42   :  { %s1283_s26 = sshll.u32 %s1696_s25, 4  ;;  %s1284_s26 = int_to_ptr.vmem [resolvable:$true] %s1283_s26 }
  0x43   :  { %154 = vrot.lane.b32.xlu0 %v1766_v6, %s1688_s2  ;;  %1368 = vmatpush3.bf16.msra.mxu0 %v1766_v6  ;;  %s1651_s27 = scalar_lea.vmem %s1284_s26, 256  ;;  %p1656_p12 = scmp.lt.s32.totalorder %s1284_s26, %s1284_s26 }
  0x44   :  { %1381 = vmatprep.subr.bf16.mxu0 %v1686_v0  ;;  %p1652_p11 = scmp.ne.s32.totalorder %s1284_s26, %s1651_s27  ;;  %p1657_p13 = scmp.lt.s32.totalorder %s1651_s27, %s1651_s27 }
  0x46   :  { %1370 = vmatmul.mubr.msk.bf16.vlgmr.msra.gmra.mxu0 %vm105_vm1, %v98_v9  ;;  %p1658_p0 = por %p1657_p13, %p1656_p12 }
  0x47   :  { %1385 = vmatprep.mubr.msk.bf16.mxu0 %vm1687_vm0, %v1686_v0 }
  0x48   :  { %p1659_p1 = pnand %p1658_p0, %p1652_p11 }
  0xb1   :  { %v157_v10 = vpop.permute.xlu0 %156 }
  0xb2   :  { %1374 = vmatpush3.bf16.msra.mxu1 %v157_v10 }
  0xb3   :  { %1375 = vmatprep.subr.bf16.mxu1 %v1686_v0 }
  0xb5   :  { %v155_v13 = vpop.permute.xlu0 %154 }
  0xb6   :  { %1376 = vmatpush3.bf16.msra.mxu1 %v155_v13 }
  0xb7   :  { %1389 = vmatprep.subr.bf16.mxu1 %v1686_v0 }
  0xb9   :  { %1378 = vmatmul.mubr.msk.bf16.vlgmr.msra.gmra.mxu1 %vm105_vm1, %v101_v14 }
  0xba   :  { %1391 = vmatprep.mubr.msk.bf16.mxu1 %vm1687_vm0, %v1686_v0 }
 0x106   :  { %v143_v15 = vpop.f32.mrf.mxu0 }
 0x107   :  { %v150_v19 = vmul.f32 0.35355338, %v143_v15 }
 0x108   :  { %v1371_v16 = vpop.f32.mrf.mxu0 }
 0x109   :  { %v254_v23 = vpack.c.bf16 %v150_v19, %v150_v19 }
 0x10a   :  { %v1781_v17 = vpop.f32.mrf.mxu0 }
 0x10b   :  { %v151_v15 = vmul.f32 0.35355338, %v1781_v17 }
 0x10c   :  { %v1372_v18 = vpop.f32.mrf.mxu0 }
 0x10d   :  { %v770_v18 = vpack.c.bf16 %v151_v15, %v151_v15 }
 0x179   :  { %v197_v20 = vpop.f32.mrf.mxu1 }
 0x17a   :  { %v255_v21 = vpack.c.bf16 %v197_v20, %v197_v20 }
 0x17b   :  { %v1379_v22 = vpop.f32.mrf.mxu1 }
 0x17c   :  { %482 = vrot.lane.b32.xlu0 %v255_v21, %s1689_s4  ;;  %370 = vrot.lane.b32.xlu1 %v255_v21, %s1690_s17  ;;  %v264_v24 = vsel %vm259_vm2, %v255_v21, 0 }
 0x17d   :  { %v1786_v25 = vpop.f32.mrf.mxu1  ;;  %1390 = vmatpush3.bf16.xpose.msra.mxu1 %v264_v24 }
 0x17e   :  { %1401 = vmatprep.subr.bf16.mxu1 %v1686_v0  ;;  %v1834_v12 = vpack.c.bf16 %v1786_v25, %v1786_v25 }
 0x17f   :  { %v1380_v26 = vpop.f32.mrf.mxu1 }
 0x180   :  { %593 = vrot.lane.b32.xlu0 %v255_v21, %s1691_s18  ;;  %367 = vrot.lane.b32.xlu1 %v254_v23, %s1690_s17 }
 0x184   :  { %480 = vrot.lane.b32.xlu1 %v254_v23, %s1689_s4  ;;  %1392 = vmatmul.mubr.msk.bf16.vlgmr.msra.gmra.mxu1 %vm259_vm2, %v254_v23 }
 0x185   :  { %206 = vrot.lane.b32.xlu0 %v1763_v4, %s1692_s19  ;;  %1403 = vmatprep.mubr.msk.bf16.mxu1 %vm1687_vm0, %v1686_v0 }
 0x188   :  { %591 = vrot.lane.b32.xlu1 %v254_v23, %s1691_s18 }
 0x18c   :  { %204 = vrot.lane.b32.xlu1 %v1766_v6, %s1692_s19 }
 0x1ee   :  { %v483_v27 = vpop.permute.xlu0 %482  ;;  %v371_v28 = vpop.permute.xlu1 %370 }
 0x1ef   :  { %v376_v29 = vsel %vm259_vm2, %v371_v28, 0  ;;  %v488_v33 = vsel %vm259_vm2, %v483_v27, 0 }
 0x1f0   :  { %1402 = vmatpush3.bf16.xpose.msra.mxu1 %v376_v29 }
 0x1f1   :  { %1413 = vmatprep.subr.bf16.mxu1 %v1686_v0 }
 0x1f2   :  { %v368_v30 = vpop.permute.xlu1 %367  ;;  %v594_v31 = vpop.permute.xlu0 %593 }
 0x1f3   :  { %v599_v40 = vsel %vm259_vm2, %v594_v31, 0 }
 0x1f6   :  { %v481_v32 = vpop.permute.xlu1 %480 }
 0x1f7   :  { %1404 = vmatmul.mubr.msk.bf16.vlgmr.msra.gmra.mxu1 %vm259_vm2, %v368_v30  ;;  %v207_v34 = vpop.permute.xlu0 %206 }
 0x1f8   :  { %1414 = vmatpush3.bf16.xpose.msra.mxu1 %v488_v33  ;;  %1415 = vmatprep.mubr.msk.bf16.mxu1 %vm1687_vm0, %v1686_v0 }
 0x1f9   :  { %1425 = vmatprep.subr.bf16.mxu1 %v1686_v0  ;;  %1382 = vmatpush3.bf16.msra.mxu0 %v207_v34 }
 0x1fa   :  { %v592_v35 = vpop.permute.xlu1 %591  ;;  %1383 = vmatprep.subr.bf16.mxu0 %v1686_v0 }
 0x1fe   :  { %v205_v38 = vpop.permute.xlu1 %204 }
 0x1ff   :  { %1416 = vmatmul.mubr.msk.bf16.vlgmr.msra.gmra.mxu1 %vm259_vm2, %v481_v32  ;;  %1384 = vmatpush3.bf16.msra.mxu0 %v205_v38 }
 0x200   :  { %1426 = vmatpush3.bf16.xpose.msra.mxu1 %v599_v40  ;;  %1427 = vmatprep.mubr.msk.bf16.mxu1 %vm1687_vm0, %v1686_v0 }
 0x201   :  { %1395 = vmatprep.subr.bf16.mxu0 %v1686_v0  ;;  %1437 = vmatprep.subr.bf16.mxu1 %v1686_v0 }
 0x202   :  { %1386 = vmatmul.mubr.msk.bf16.vlgmr.msra.gmra.mxu0 %vm105_vm1, %v104_v39 }
 0x203   :  { %1397 = vmatprep.mubr.msk.bf16.mxu0 %vm1687_vm0, %v1686_v0 }
 0x207   :  { %1428 = vmatmul.mubr.msk.bf16.vlgmr.msra.gmra.mxu1 %vm259_vm2, %v592_v35 }
 0x208   :  { %1441 = vmatprep.mubr.msk.bf16.mxu1 %vm1687_vm0, %v1686_v0 }
 0x244   :  { %v300_v42 = vpop.f32.mrf.mxu1 }
 0x245   :  { %v306_v43 = vsel %vm258_vm3, %v300_v42, -1e+30 }
 0x246   :  { %v1393_v44 = vpop.f32.mrf.mxu1  ;;  %v307_v45 = vsel %vm259_vm2, %v306_v43, -inf }
 0x247   :  { %308 = vmax.xlane.f32.xlu0 %v307_v45 }
 0x248   :  { %v303_v46 = vpop.f32.mrf.mxu1 }
 0x24a   :  { %v1394_v47 = vpop.f32.mrf.mxu1 }
 0x24b   :  { %v780_v47 = vsel %vm259_vm2, %v1834_v12, 0 }
 0x2b7   :  { %v412_v48 = vpop.f32.mrf.mxu1 }
 0x2b8   :  { %v418_v49 = vsel %vm258_vm3, %v412_v48, -1e+30 }
 0x2b9   :  { %v1405_v50 = vpop.f32.mrf.mxu1  ;;  %v419_v51 = vsel %vm259_vm2, %v418_v49, -inf }
 0x2ba   :  { %420 = vmax.xlane.f32.xlu1 %v419_v51 }
 0x2bb   :  { %v415_v52 = vpop.f32.mrf.mxu1 }
 0x2bd   :  { %v1406_v53 = vpop.f32.mrf.mxu1 }
 0x2bf   :  { %v524_v54 = vpop.f32.mrf.mxu1 }
 0x2c0   :  { %v530_v55 = vsel %vm258_vm3, %v524_v54, -1e+30 }
 0x2c1   :  { %v1417_v56 = vpop.f32.mrf.mxu1  ;;  %v531_v57 = vsel %vm259_vm2, %v530_v55, -inf }
 0x2c2   :  { %532 = vmax.xlane.f32.xlu0 %v531_v57  ;;  %v247_v58 = vpop.f32.mrf.mxu0 }
 0x2c3   :  { %v527_v59 = vpop.f32.mrf.mxu1  ;;  %v256_v60 = vpack.c.bf16 %v247_v58, %v247_v58 }
 0x2c4   :  { %v1387_v61 = vpop.f32.mrf.mxu0 }
 0x2c5   :  { %v1418_v62 = vpop.f32.mrf.mxu1  ;;  %v322_v63 = vsel %vm320_vm4, %v256_v60, 0 }
 0x2c6   :  { %v1825_v1 = vpop.f32.mrf.mxu0  ;;  %1396 = vmatpush3.bf16.msra.mxu0 %v322_v63 }
 0x2c7   :  { %v635_v2 = vpop.f32.mrf.mxu1  ;;  %1407 = vmatprep.subr.bf16.mxu0 %v1686_v0 }
 0x2c8   :  { %v641_v3 = vsel %vm258_vm3, %v635_v2, -1e+30  ;;  %v1388_v5 = vpop.f32.mrf.mxu0 }
 0x2c9   :  { %v1429_v7 = vpop.f32.mrf.mxu1  ;;  %v642_v8 = vsel %vm259_vm2, %v641_v3, -inf }
 0x2ca   :  { %643 = vmax.xlane.f32.xlu0 %v642_v8 }
 0x2cb   :  { %v638_v9 = vpop.f32.mrf.mxu1  ;;  %430 = vrot.lane.b32.xlu1 %v256_v60, %s1690_s17 }
 0x2cd   :  { %v1430_v10 = vpop.f32.mrf.mxu1 }
 0x2cf   :  { %652 = vrot.lane.b32.xlu1 %v256_v60, %s1691_s18 }
 0x2d0   :  { %v309_v11 = vpop.xlane.xlu0 %308 }
 0x2d1   :  { %v310_v13 = vsub.f32 %v306_v43, %v309_v11 }
 0x2d3   :  { %v311_v14 = vmul.f32 1.442695, %v310_v13  ;;  %885 = vrot.lane.b32.xlu1 %v1834_v12, %s1690_s17 }
 0x2d5   :  { %1519 = vpow2.f32 %v311_v14 }
 0x2d7   :  { %997 = vrot.lane.b32.xlu1 %v1834_v12, %s1689_s4 }
 0x2db   :  { %1108 = vrot.lane.b32.xlu1 %v1834_v12, %s1691_s18 }
 0x2df   :  { %722 = vrot.lane.b32.xlu1 %v1763_v4, %s1693_s20 }
 0x2e0   :  { %541 = vrot.lane.b32.xlu0 %v256_v60, %s1689_s4 }
 0x2e2   :  { %v1520_v16 = vpop.eup %1519 }
 0x2e3   :  { %v316_v19 = vpack.c.bf16 %v1520_v16, %v1520_v16  ;;  %v313_v17 = vsel %vm259_vm2, %v1520_v16, 0.0 }
 0x2e4   :  { %882 = vrot.lane.b32.xlu0 %v770_v18, %s1690_s17 }
 0x2e5   :  { %1398 = vmatmul.mubr.msk.bf16.vlgmr.msra.gmra.mxu0 %vm259_vm2, %v316_v19 }
 0x2e6   :  { %1409 = vmatprep.mubr.msk.bf16.mxu0 %vm1687_vm0, %v1686_v0 }
 0x2e8   :  { %995 = vrot.lane.b32.xlu0 %v770_v18, %s1689_s4 }
 0x2ec   :  { %1106 = vrot.lane.b32.xlu0 %v770_v18, %s1691_s18 }
 0x303   :  { %314 = vadd.xlane.f32.xlu1 %v313_v17 }
 0x343   :  { %v421_v4 = vpop.xlane.xlu1 %420 }
 0x344   :  { %v422_v20 = vsub.f32 %v418_v49, %v421_v4 }
 0x346   :  { %v423_v21 = vmul.f32 1.442695, %v422_v20 }
 0x347   :  { %v431_v22 = vpop.permute.xlu1 %430 }
 0x348   :  { %1521 = vpow2.f32 %v423_v21  ;;  %v436_v23 = vsel %vm320_vm4, %v431_v22, 0 }
 0x349   :  { %1408 = vmatpush3.bf16.msra.mxu0 %v436_v23 }
 0x34a   :  { %1419 = vmatprep.subr.bf16.mxu0 %v1686_v0 }
 0x34b   :  { %v533_v24 = vpop.xlane.xlu0 %532  ;;  %v653_v25 = vpop.permute.xlu1 %652 }
 0x34c   :  { %v534_v26 = vsub.f32 %v530_v55, %v533_v24  ;;  %v658_v43 = vsel %vm320_vm4, %v653_v25, 0 }
 0x34e   :  { %v535_v27 = vmul.f32 1.442695, %v534_v26 }
 0x34f   :  { %v886_v28 = vpop.permute.xlu1 %885 }
 0x350   :  { %1523 = vpow2.f32 %v535_v27  ;;  %v891_v48 = vsel %vm259_vm2, %v886_v28, 0 }
 0x353   :  { %v644_v29 = vpop.xlane.xlu0 %643  ;;  %v998_v30 = vpop.permute.xlu1 %997 }
 0x354   :  { %v645_v31 = vsub.f32 %v641_v3, %v644_v29  ;;  %v1003_v50 = vsel %vm259_vm2, %v998_v30, 0 }
 0x355   :  { %v1522_v32 = vpop.eup %1521 }
 0x356   :  { %v646_v33 = vmul.f32 1.442695, %v645_v31  ;;  %v425_v34 = vsel %vm259_vm2, %v1522_v32, 0.0  ;;  %v428_v35 = vpack.c.bf16 %v1522_v32, %v1522_v32 }
 0x357   :  { %v542_v36 = vpop.permute.xlu0 %541  ;;  %426 = vadd.xlane.f32.xlu1 %v425_v34  ;;  %v1109_v37 = vpop.permute.xlu1 %1108 }
 0x358   :  { %1525 = vpow2.f32 %v646_v33  ;;  %v547_v38 = vsel %vm320_vm4, %v542_v36, 0  ;;  %1410 = vmatmul.mubr.msk.bf16.vlgmr.msra.gmra.mxu0 %vm259_vm2, %v428_v35  ;;  %v1114_v52 = vsel %vm259_vm2, %v1109_v37, 0 }
 0x359   :  { %1420 = vmatpush3.bf16.msra.mxu0 %v547_v38  ;;  %1421 = vmatprep.mubr.msk.bf16.mxu0 %vm1687_vm0, %v1686_v0 }
 0x35a   :  { %1431 = vmatprep.subr.bf16.mxu0 %v1686_v0 }
 0x35b   :  { %v723_v39 = vpop.permute.xlu1 %722  ;;  %v883_v49 = vpop.permute.xlu0 %882 }
 0x35c   :  { %1438 = vmatpush3.bf16.msra.mxu1 %v723_v39 }
 0x35d   :  { %v1524_v40 = vpop.eup %1523  ;;  %1439 = vmatprep.subr.bf16.mxu1 %v1686_v0 }
 0x35e   :  { %v537_v41 = vsel %vm259_vm2, %v1524_v40, 0.0  ;;  %v540_v42 = vpack.c.bf16 %v1524_v40, %v1524_v40 }
 0x35f   :  { %538 = vadd.xlane.f32.xlu0 %v537_v41  ;;  %v996_v51 = vpop.permute.xlu0 %995 }
 0x360   :  { %1422 = vmatmul.mubr.msk.bf16.vlgmr.msra.gmra.mxu0 %vm259_vm2, %v540_v42 }
 0x361   :  { %1432 = vmatpush3.bf16.msra.mxu0 %v658_v43  ;;  %1433 = vmatprep.mubr.msk.bf16.mxu0 %vm1687_vm0, %v1686_v0 }
 0x362   :  { %1445 = vmatprep.subr.bf16.mxu0 %v1686_v0 }
 0x363   :  { %v1107_v53 = vpop.permute.xlu0 %1106 }
 0x365   :  { %v1526_v44 = vpop.eup %1525 }
 0x366   :  { %v648_v45 = vsel %vm259_vm2, %v1526_v44, 0.0  ;;  %v651_v46 = vpack.c.bf16 %v1526_v44, %v1526_v44  ;;  %v772_v44 = vpack.c.bf16 %v1825_v1, %v1825_v1 }
 0x367   :  { %649 = vadd.xlane.f32.xlu0 %v648_v45 }
 0x368   :  { %1434 = vmatmul.mubr.msk.bf16.vlgmr.msra.gmra.mxu0 %vm259_vm2, %v651_v46 }
 0x369   :  { %1446 = vmatpush3.bf16.xpose.msra.mxu0 %v780_v47  ;;  %1447 = vmatprep.mubr.msk.bf16.mxu0 %vm1687_vm0, %v1686_v0 }
 0x36a   :  { %1457 = vmatprep.subr.bf16.mxu0 %v1686_v0 }
 0x370   :  { %1448 = vmatmul.mubr.msk.bf16.vlgmr.msra.gmra.mxu0 %vm259_vm2, %v770_v18  ;;  %v774_v18 = vld [vmem:[#allocation8 + $0x8] sm:$0xff] }
 0x371   :  { %1458 = vmatpush3.bf16.xpose.msra.mxu0 %v891_v48  ;;  %1459 = vmatprep.mubr.msk.bf16.mxu0 %vm1687_vm0, %v1686_v0  ;;  %vm775_vm5 = vcmp.ne.s32.totalorder %v774_v18, 0 }
 0x372   :  { %1469 = vmatprep.subr.bf16.mxu0 %v1686_v0 }
 0x378   :  { %1460 = vmatmul.mubr.msk.bf16.vlgmr.msra.gmra.mxu0 %vm259_vm2, %v883_v49 }
 0x379   :  { %1470 = vmatpush3.bf16.xpose.msra.mxu0 %v1003_v50  ;;  %1471 = vmatprep.mubr.msk.bf16.mxu0 %vm1687_vm0, %v1686_v0 }
 0x37a   :  { %1481 = vmatprep.subr.bf16.mxu0 %v1686_v0 }
 0x380   :  { %1472 = vmatmul.mubr.msk.bf16.vlgmr.msra.gmra.mxu0 %vm259_vm2, %v996_v51 }
 0x381   :  { %1482 = vmatpush3.bf16.xpose.msra.mxu0 %v1114_v52  ;;  %1483 = vmatprep.mubr.msk.bf16.mxu0 %vm1687_vm0, %v1686_v0 }
 0x382   :  { %1493 = vmatprep.subr.bf16.mxu0 %v1686_v0 }
 0x388   :  { %1484 = vmatmul.mubr.msk.bf16.vlgmr.msra.gmra.mxu0 %vm259_vm2, %v1107_v53 }
 0x389   :  { %1494 = vmatpush3.bf16.msra.mxu0 %v723_v39  ;;  %1497 = vmatprep.mubr.msk.bf16.mxu0 %vm1687_vm0, %v1686_v0 }
 0x38a   :  { %1495 = vmatprep.subr.bf16.mxu0 %v1686_v0 }
 0x38c   :  { %v1896_v58 = vpop.xlane.xlu1 %314 }
 0x3a5   :  { %v1894_v54 = vpop.f32.mrf.mxu0 }
 0x3a7   :  { %v1399_v55 = vpop.f32.mrf.mxu0 }
 0x3a9   :  { %v361_v56 = vpop.f32.mrf.mxu0 }
 0x3ab   :  { %v1400_v57 = vpop.f32.mrf.mxu0 }
 0x3e0   :  { %v427_v59 = vpop.xlane.xlu1 %426 }
 0x3e1   :  { %1527 = vrcp.f32 %v427_v59 }
 0x3e8   :  { %v539_v60 = vpop.xlane.xlu0 %538 }
 0x3e9   :  { %1529 = vrcp.f32 %v539_v60  ;;  %v837_v60 = vsel %vm320_vm4, %v772_v44, 0 }
 0x3ee   :  { %v1528_v61 = vpop.eup %1527 }
 0x3f0   :  { %v650_v31 = vpop.xlane.xlu0 %649 }
 0x3f1   :  { %1531 = vrcp.f32 %v650_v31 }
 0x3f2   :  { %1533 = vrcp.f32 %v1896_v58 }
 0x3f6   :  { %v1530_v7 = vpop.eup %1529 }
 0x3fe   :  { %v1532_v38 = vpop.eup %1531 }
 0x3ff   :  { %v1534_v1 = vpop.eup %1533 }
 0x400   :  { %v365_v51 = vmul.f32 %v1534_v1, %v1894_v54 }
 0x418   :  { %v472_v62 = vpop.f32.mrf.mxu0 }
 0x419   :  { %v479_v63 = vmul.f32 %v1528_v61, %v472_v62 }
 0x41a   :  { %v1411_v2 = vpop.f32.mrf.mxu0 }
 0x41b   :  { %703 = vrot.lane.b32.xlu0 %v479_v63, %s1682_s24 }
 0x41c   :  { %v475_v3 = vpop.f32.mrf.mxu0 }
 0x41e   :  { %v1412_v5 = vpop.f32.mrf.mxu0 }
 0x420   :  { %v583_v8 = vpop.f32.mrf.mxu0 }
 0x421   :  { %v590_v9 = vmul.f32 %v1530_v7, %v583_v8 }
 0x422   :  { %v1423_v10 = vpop.f32.mrf.mxu0 }
 0x423   :  { %707 = vrot.lane.b32.xlu1 %v590_v9, %s1694_s21 }
 0x424   :  { %v586_v11 = vpop.f32.mrf.mxu0 }
 0x426   :  { %v1424_v12 = vpop.f32.mrf.mxu0 }
 0x428   :  { %v694_v13 = vpop.f32.mrf.mxu0 }
 0x429   :  { %v701_v39 = vmul.f32 %v1532_v38, %v694_v13 }
 0x42a   :  { %v1435_v14 = vpop.f32.mrf.mxu0 }
 0x42c   :  { %v697_v15 = vpop.f32.mrf.mxu0 }
 0x42e   :  { %v1436_v16 = vpop.f32.mrf.mxu0 }
 0x430   :  { %v816_v19 = vpop.f32.mrf.mxu0 }
 0x431   :  { %v822_v20 = vsel %vm775_vm5, %v816_v19, -1e+30 }
 0x432   :  { %v1449_v17 = vpop.f32.mrf.mxu0  ;;  %v823_v23 = vsel %vm259_vm2, %v822_v20, -inf }
 0x434   :  { %v819_v4 = vpop.f32.mrf.mxu0 }
 0x436   :  { %v1450_v21 = vpop.f32.mrf.mxu0 }
 0x438   :  { %v927_v22 = vpop.f32.mrf.mxu0 }
 0x439   :  { %v933_v29 = vsel %vm775_vm5, %v927_v22, -1e+30 }
 0x43a   :  { %824 = vmax.xlane.f32.xlu0 %v823_v23  ;;  %v1461_v24 = vpop.f32.mrf.mxu0  ;;  %v934_v33 = vsel %vm259_vm2, %v933_v29, -inf }
 0x43c   :  { %v930_v25 = vpop.f32.mrf.mxu0 }
 0x43e   :  { %v1462_v26 = vpop.f32.mrf.mxu0 }
 0x440   :  { %v1039_v27 = vpop.f32.mrf.mxu0 }
 0x441   :  { %v1045_v40 = vsel %vm775_vm5, %v1039_v27, -1e+30 }
 0x442   :  { %v1473_v28 = vpop.f32.mrf.mxu0  ;;  %v1046_v41 = vsel %vm259_vm2, %v1045_v40, -inf }
 0x444   :  { %v1042_v30 = vpop.f32.mrf.mxu0 }
 0x446   :  { %v1474_v32 = vpop.f32.mrf.mxu0 }
 0x447   :  { %935 = vmax.xlane.f32.xlu1 %v934_v33 }
 0x448   :  { %v1150_v34 = vpop.f32.mrf.mxu0 }
 0x449   :  { %v1156_v42 = vsel %vm775_vm5, %v1150_v34, -1e+30 }
 0x44a   :  { %v1485_v35 = vpop.f32.mrf.mxu0  ;;  %v1157_v43 = vsel %vm259_vm2, %v1156_v42, -inf }
 0x44c   :  { %v1153_v36 = vpop.f32.mrf.mxu0 }
 0x44e   :  { %v1486_v37 = vpop.f32.mrf.mxu0 }
 0x450   :  { %720 = vrot.lane.b32.xlu0 %v1766_v6, %s1693_s20 }
 0x458   :  { %711 = vrot.lane.b32.xlu1 %v701_v39, %s1695_s22 }
 0x46f   :  { %1047 = vmax.xlane.f32.xlu0 %v1046_v41 }
 0x47c   :  { %1158 = vmax.xlane.f32.xlu1 %v1157_v43 }
 0x485   :  { %945 = vrot.lane.b32.xlu0 %v772_v44, %s1690_s17 }
 0x489   :  { %1056 = vrot.lane.b32.xlu0 %v772_v44, %s1689_s4 }
 0x48d   :  { %1167 = vrot.lane.b32.xlu0 %v772_v44, %s1691_s18  ;;  %v704_v6 = vpop.permute.xlu0 %703 }
 0x48e   :  { %v714_v53 = vsel %vm259_vm2, %v365_v51, %v704_v6 }
 0x495   :  { %v708_v49 = vpop.permute.xlu1 %707 }
 0x496   :  { %v716_v56 = vsel %vm715_vm6, %v714_v53, %v708_v49 }
 0x4c3   :  { %v825_v45 = vpop.xlane.xlu0 %824 }
 0x4c4   :  { %v826_v46 = vsub.f32 %v822_v20, %v825_v45 }
 0x4c6   :  { %v827_v48 = vmul.f32 1.442695, %v826_v46 }
 0x4c7   :  { %v721_v47 = vpop.permute.xlu0 %720 }
 0x4c8   :  { %1440 = vmatpush3.bf16.msra.mxu1 %v721_v47  ;;  %1496 = vmatpush3.bf16.msra.mxu0 %v721_v47  ;;  %1535 = vpow2.f32 %v827_v48 }
 0x4c9   :  { %1451 = vmatprep.subr.bf16.mxu1 %v1686_v0 }
 0x4d0   :  { %v936_v50 = vpop.xlane.xlu1 %935 }
 0x4d1   :  { %v937_v52 = vsub.f32 %v933_v29, %v936_v50 }
 0x4d3   :  { %v938_v55 = vmul.f32 1.442695, %v937_v52 }
 0x4d4   :  { %v712_v57 = vpop.permute.xlu1 %711 }
 0x4d5   :  { %1537 = vpow2.f32 %v938_v55  ;;  %v718_v58 = vsel %vm717_vm7, %v716_v56, %v712_v57  ;;  %v1536_v54 = vpop.eup %1535 }
 0x4d6   :  { %v719_v59 = vpack.c.bf16 %v718_v58, %v718_v58  ;;  %v832_v61 = vpack.c.bf16 %v1536_v54, %v1536_v54  ;;  %v829_v22 = vsel %vm259_vm2, %v1536_v54, 0.0 }
 0x4d8   :  { %1442 = vmatmul.mubr.msk.bf16.vlgmr.msra.gmra.mxu1 %vm105_vm1, %v719_v59 }
 0x4d9   :  { %1452 = vmatpush3.bf16.msra.mxu1 %v837_v60  ;;  %1453 = vmatprep.mubr.msk.bf16.mxu1 %vm1687_vm0, %v1686_v0 }
 0x4da   :  { %1463 = vmatprep.subr.bf16.mxu1 %v1686_v0 }
 0x4e0   :  { %1454 = vmatmul.mubr.msk.bf16.vlgmr.msra.gmra.mxu1 %vm259_vm2, %v832_v61 }
 0x4e1   :  { %1465 = vmatprep.mubr.msk.bf16.mxu1 %vm1687_vm0, %v1686_v0 }
 0x4e2   :  { %v1538_v62 = vpop.eup %1537 }
 0x4e3   :  { %v940_v63 = vsel %vm259_vm2, %v1538_v62, 0.0  ;;  %v943_v9 = vpack.c.bf16 %v1538_v62, %v1538_v62 }
 0x4e4   :  { %941 = vadd.xlane.f32.xlu0 %v940_v63 }
 0x4f8   :  { %v1048_v2 = vpop.xlane.xlu0 %1047 }
 0x4f9   :  { %v1049_v3 = vsub.f32 %v1045_v40, %v1048_v2 }
 0x4fb   :  { %v1050_v5 = vmul.f32 1.442695, %v1049_v3 }
 0x4fc   :  { %v946_v7 = vpop.permute.xlu0 %945 }
 0x4fd   :  { %1539 = vpow2.f32 %v1050_v5  ;;  %v951_v8 = vsel %vm320_vm4, %v946_v7, 0 }
 0x4fe   :  { %1464 = vmatpush3.bf16.msra.mxu1 %v951_v8 }
 0x4ff   :  { %1475 = vmatprep.subr.bf16.mxu1 %v1686_v0 }
 0x500   :  { %v1057_v10 = vpop.permute.xlu0 %1056 }
 0x501   :  { %v1062_v11 = vsel %vm320_vm4, %v1057_v10, 0  ;;  %1466 = vmatmul.mubr.msk.bf16.vlgmr.msra.gmra.mxu1 %vm259_vm2, %v943_v9 }
 0x502   :  { %1476 = vmatpush3.bf16.msra.mxu1 %v1062_v11  ;;  %1477 = vmatprep.mubr.msk.bf16.mxu1 %vm1687_vm0, %v1686_v0 }
 0x503   :  { %1487 = vmatprep.subr.bf16.mxu1 %v1686_v0 }
 0x504   :  { %v1168_v16 = vpop.permute.xlu0 %1167 }
 0x505   :  { %v1159_v12 = vpop.xlane.xlu1 %1158  ;;  %v1173_v17 = vsel %vm320_vm4, %v1168_v16, 0 }
 0x506   :  { %v1160_v13 = vsub.f32 %v1156_v42, %v1159_v12 }
 0x508   :  { %v1161_v14 = vmul.f32 1.442695, %v1160_v13 }
 0x50a   :  { %v1540_v15 = vpop.eup %1539  ;;  %1541 = vpow2.f32 %v1161_v14 }
 0x50b   :  { %v1052_v18 = vsel %vm259_vm2, %v1540_v15, 0.0  ;;  %v1055_v19 = vpack.c.bf16 %v1540_v15, %v1540_v15 }
 0x50c   :  { %1053 = vadd.xlane.f32.xlu1 %v1052_v18 }
 0x50d   :  { %1478 = vmatmul.mubr.msk.bf16.vlgmr.msra.gmra.mxu1 %vm259_vm2, %v1055_v19 }
 0x50e   :  { %1488 = vmatpush3.bf16.msra.mxu1 %v1173_v17  ;;  %1489 = vmatprep.mubr.msk.bf16.mxu1 %vm1687_vm0, %v1686_v0 }
 0x517   :  { %v1542_v4 = vpop.eup %1541 }
 0x518   :  { %v1163_v20 = vsel %vm259_vm2, %v1542_v4, 0.0  ;;  %v1166_v21 = vpack.c.bf16 %v1542_v4, %v1542_v4 }
 0x519   :  { %1164 = vadd.xlane.f32.xlu1 %v1163_v20 }
 0x51a   :  { %1490 = vmatmul.mubr.msk.bf16.vlgmr.msra.gmra.mxu1 %vm259_vm2, %v1166_v21 }
 0x51d   :  { %830 = vadd.xlane.f32.xlu1 %v829_v22 }
 0x56d   :  { %v942_v30 = vpop.xlane.xlu0 %941 }
 0x56e   :  { %1543 = vrcp.f32 %v942_v30 }
 0x57b   :  { %v1544_v32 = vpop.eup %1543 }
 0x595   :  { %v1054_v31 = vpop.xlane.xlu1 %1053 }
 0x596   :  { %1545 = vrcp.f32 %v1054_v31 }
 0x598   :  { %v763_v23 = vpop.f32.mrf.mxu1 }
 0x599   :  { %769 = vst.msk [vmem:[#allocation11] sm:$0xff] %vm105_vm1, %v763_v23 }
 0x59a   :  { %v1443_v24 = vpop.f32.mrf.mxu1 }
 0x59c   :  { %v766_v25 = vpop.f32.mrf.mxu1 }
 0x59e   :  { %v1444_v26 = vpop.f32.mrf.mxu1 }
 0x5a0   :  { %v873_v27 = vpop.f32.mrf.mxu1 }
 0x5a2   :  { %v1455_v28 = vpop.f32.mrf.mxu1  ;;  %v1165_v38 = vpop.xlane.xlu1 %1164 }
 0x5a3   :  { %v1546_v39 = vpop.eup %1545  ;;  %1547 = vrcp.f32 %v1165_v38 }
 0x5a4   :  { %v876_v29 = vpop.f32.mrf.mxu1 }
 0x5a6   :  { %v1456_v0 = vpop.f32.mrf.mxu1  ;;  %v831_v1 = vpop.xlane.xlu1 %830 }
 0x5a7   :  { %1549 = vrcp.f32 %v831_v1 }
 0x5b0   :  { %v1548_v6 = vpop.eup %1547 }
 0x5b4   :  { %v1550_v50 = vpop.eup %1549 }
 0x5b5   :  { %v880_v53 = vmul.f32 %v1550_v50, %v873_v27 }
 0x5c1   :  { %v987_v33 = vpop.f32.mrf.mxu1 }
 0x5c2   :  { %v994_v34 = vmul.f32 %v1544_v32, %v987_v33 }
 0x5c3   :  { %v1467_v35 = vpop.f32.mrf.mxu1 }
 0x5c4   :  { %1218 = vrot.lane.b32.xlu0 %v994_v34, %s1682_s24 }
 0x5c5   :  { %v990_v36 = vpop.f32.mrf.mxu1 }
 0x5c7   :  { %v1468_v37 = vpop.f32.mrf.mxu1 }
 0x5cd   :  { %v1098_v40 = vpop.f32.mrf.mxu1 }
 0x5ce   :  { %v1105_v41 = vmul.f32 %v1546_v39, %v1098_v40 }
 0x5cf   :  { %v1479_v42 = vpop.f32.mrf.mxu1 }
 0x5d0   :  { %1222 = vrot.lane.b32.xlu1 %v1105_v41, %s1694_s21 }
 0x5d1   :  { %v1101_v43 = vpop.f32.mrf.mxu1 }
 0x5d3   :  { %v1480_v44 = vpop.f32.mrf.mxu1 }
 0x5da   :  { %v1209_v45 = vpop.f32.mrf.mxu1 }
 0x5db   :  { %v1216_v46 = vmul.f32 %v1548_v6, %v1209_v45 }
 0x5dc   :  { %v1491_v47 = vpop.f32.mrf.mxu1 }
 0x5dd   :  { %1226 = vrot.lane.b32.xlu1 %v1216_v46, %s1695_s22 }
 0x5de   :  { %v1212_v48 = vpop.f32.mrf.mxu1 }
 0x5e0   :  { %v1492_v49 = vpop.f32.mrf.mxu1 }
 0x636   :  { %v1219_v51 = vpop.permute.xlu0 %1218 }
 0x637   :  { %v1229_v55 = vsel %vm259_vm2, %v880_v53, %v1219_v51 }
 0x642   :  { %v1223_v52 = vpop.permute.xlu1 %1222 }
 0x643   :  { %v1230_v56 = vsel %vm715_vm6, %v1229_v55, %v1223_v52 }
 0x64f   :  { %v1227_v57 = vpop.permute.xlu1 %1226 }
 0x650   :  { %v1231_v58 = vsel %vm717_vm7, %v1230_v56, %v1227_v57 }
 0x651   :  { %v1232_v59 = vpack.c.bf16 %v1231_v58, %v1231_v58 }
 0x653   :  { %1498 = vmatmul.mubr.msk.bf16.vlgmr.msra.gmra.mxu0 %vm105_vm1, %v1232_v59 }
 0x713   :  { %v1270_v60 = vpop.f32.mrf.mxu0 }
 0x714   :  { %1277 = vst.msk [vmem:[#allocation11 + $0x8] sm:$0xff] %vm105_vm1, %v1270_v60 }
 0x715   :  { %v1499_v54 = vpop.f32.mrf.mxu0 }
 0x716   :  { %1662 = shalt.err (!%p1659_p1)
}
 0x717   :  { %1289 = dma.vmem_to_hbm [thread:$0]  %s1284_s26, 256, %s1966_s5, [#allocation4], %s1681_s23, %s1681_s23, %s1682_s24   ;;  %v1273_v61 = vpop.f32.mrf.mxu0 }
 0x719   :  { %v1500_v62 = vpop.f32.mrf.mxu0 }
 0x71a   :  { %1677 = dma.done.wait [#allocation4], 256  }
 0x71b   :  { %1678 = vsyncadd [#allocation4], 4294967040 }
 0x71c   :  { %1293 = vsyncpa [#allocation3], 1 }
 0x71d   :  { %1294 = vsyncpa [#allocation6], 1 }
 0x71e   :  { %1295 = vsyncpa [#allocation9], 1 }
 0x71f   :  { %1296 = vsyncpa [#allocation4], 1 }

</bundles_post_ra>
